<compile_context>
chip_gen: v7x
topology: tpu7x:2x2x1
jax: 0.10.0
libtpu: 0.0.40
codegen_flags: <defaults>
</compile_context>

<pallas_src>
import functools

import jax
import jax.numpy as jnp
from jax.experimental import pallas as pl
from jax.experimental.pallas import tpu as pltpu


def conv1x1_bn_relu_kernel(x_ref, w_ref, s_ref, b_ref, o_ref, *, mxu_bf16):
    # x_ref: (Cin, T)   one (batch-item, pixel-tile) slab, pixels on lanes
    # w_ref: (Cout, Cin) 1x1 conv weight
    # s_ref: (Cout, 1)   folded BN scale
    # b_ref: (Cout, 1)   folded BN bias
    # o_ref: (Cout, T)
    x = x_ref[...]
    w = w_ref[...]
    if mxu_bf16:
        # bf16 MXU operands, f32 accumulation (v6e/v7x fast path)
        x = x.astype(jnp.bfloat16)
        w = w.astype(jnp.bfloat16)
    acc = jnp.dot(w, x, preferred_element_type=jnp.float32)   # (Cout, T) on MXU
    y = acc * s_ref[...] + b_ref[...]                          # epilogue in f32
    o_ref[...] = jnp.maximum(y, 0.0).astype(o_ref.dtype)


def _fold_bn(gamma, beta, mean, var, eps=1e-5):
    scale = gamma / jnp.sqrt(var + eps)
    bias = beta - mean * scale
    return scale, bias


def _pick_hw_tile(HW, Cin, Cout, budget_bytes=8 << 20):
    """Largest pixel tile that divides H*W, is a multiple of 128 (unless it is
    the full extent), and keeps the per-step block bytes under budget — sized
    conservatively so double-buffered tiles fit v7x's 32 MiB scoped VMEM."""
    if HW % 128 != 0:
        return HW  # block must equal the full dim when not 128-divisible
    per_pixel_bytes = 4 * (Cin + Cout)
    best = 128
    for cand in range(128, HW + 1, 128):
        if HW % cand == 0 and cand * per_pixel_bytes <= budget_bytes:
            best = cand
    return best


def conv1x1_layer_forward(x_nchw, params, eps=1e-5, use_bf16_mxu=False):
    """x_nchw: (N, Cin, H, W) float32.  Returns (N, Cout, H, W) float32."""
    N, Cin, H, W = x_nchw.shape
    Cout = params["conv1_w"].shape[0]
    HW = H * W

    # NCHW stays NCHW: (N, Cin, H, W) -> (N, Cin, H*W) is a free reshape.
    x2 = x_nchw.reshape(N, Cin, HW)
    w = params["conv1_w"].reshape(Cout, Cin)           # (Cout, Cin, 1, 1) -> 2D
    scale, bias = _fold_bn(params["bn1_g"], params["bn1_b"],
                           params["bn1_m"], params["bn1_v"], eps)
    scale = scale.reshape(Cout, 1)
    bias = bias.reshape(Cout, 1)

    T = _pick_hw_tile(HW, Cin, Cout)
    grid = (N, HW // T)

    # Advisory cost for XLA scheduling around the custom call.
    cost = pl.CostEstimate(
        flops=2 * N * HW * Cin * Cout,
        transcendentals=0,
        bytes_accessed=4 * (N * HW * Cin + N * HW * Cout + Cin * Cout + 2 * Cout))

    # Per-step working set (x-tile + out-tile + params), x2 for double
    # buffering, plus headroom; clamped under the v7x scoped-VMEM default.
    step_bytes = 4 * (Cin * T + Cout * T + Cout * Cin + 2 * Cout)
    vmem_limit = int(min(max(4 * step_bytes, 4 << 20), 32 << 20))

    kernel = functools.partial(conv1x1_bn_relu_kernel, mxu_bf16=use_bf16_mxu)

    out2 = pl.pallas_call(
        kernel,
        out_shape=jax.ShapeDtypeStruct((N, Cout, HW), jnp.float32),
        grid=grid,
        in_specs=[
            # batch dim squeezed; pixel axis tiled (lane-dense)
            pl.BlockSpec((None, Cin, T), lambda n, j: (n, 0, j)),
            pl.BlockSpec((Cout, Cin), lambda n, j: (0, 0)),
            pl.BlockSpec((Cout, 1), lambda n, j: (0, 0)),
            pl.BlockSpec((Cout, 1), lambda n, j: (0, 0)),
        ],
        out_specs=pl.BlockSpec((None, Cout, T), lambda n, j: (n, 0, j)),
        compiler_params=pltpu.CompilerParams(
            dimension_semantics=("parallel", "parallel"),
            vmem_limit_bytes=vmem_limit),
        cost_estimate=cost,
    )(x2, w, scale, bias)

    return out2.reshape(N, Cout, H, W)


def reference_forward(x_nchw, params, eps=1e-5):
    """Pure-JAX reference (lax.conv) with the same inference-mode BN."""
    out = jax.lax.conv_general_dilated(
        x_nchw, params["conv1_w"], window_strides=(1, 1), padding="VALID",
        dimension_numbers=("NCHW", "OIHW", "NCHW"))
    g, b, m, v = (params["bn1_g"], params["bn1_b"],
                  params["bn1_m"], params["bn1_v"])
    out = (out - m[None, :, None, None]) / jnp.sqrt(v + eps)[None, :, None, None] \
          * g[None, :, None, None] + b[None, :, None, None]
    return jnp.maximum(out, 0.0)


def make_params(key, inplanes, planes):
    ks = jax.random.split(key, 5)
    std = (2.0 / inplanes) ** 0.5
    return {
        "conv1_w": std * jax.random.normal(ks[0], (planes, inplanes, 1, 1),
                                           jnp.float32),
        "bn1_g": 1.0 + 0.1 * jax.random.normal(ks[1], (planes,), jnp.float32),
        "bn1_b": 0.1 * jax.random.normal(ks[2], (planes,), jnp.float32),
        "bn1_m": 0.1 * jax.random.normal(ks[3], (planes,), jnp.float32),
        "bn1_v": jnp.abs(1.0 + 0.1 * jax.random.normal(ks[4], (planes,),
                                                       jnp.float32)),
    }


if __name__ == "__main__":
    key = jax.random.PRNGKey(0)
    kx, kp = jax.random.split(key)

    N, Cin, Cout, H, W = 2, 4, 8, 16, 16   # inplanes=4, planes=8, stride=1
    x = jax.random.normal(kx, (N, Cin, H, W), jnp.float32)
    params = make_params(kp, Cin, Cout)

    fwd = jax.jit(conv1x1_layer_forward)
    out = jax.block_until_ready(fwd(x, params))

    ref = reference_forward(x, params)
    assert out.shape == (N, Cout, H, W)
    max_err = jnp.max(jnp.abs(out - ref))
    assert jnp.allclose(out, ref, atol=1e-4, rtol=1e-4), \
        f"max abs err {max_err}"

    print("KERNEL_OK")
</pallas_src>

<mosaic_0001>
module attributes {stable_mosaic.version = 11 : i64} {
  func.func @conv1x1_bn_relu_kernel(%arg0: i32, %arg1: i32, %arg2: memref<1x4x256xf32, #tpu.memory_space<vmem>>, %arg3: memref<8x4xf32, #tpu.memory_space<vmem>>, %arg4: memref<8x1xf32, #tpu.memory_space<vmem>>, %arg5: memref<8x1xf32, #tpu.memory_space<vmem>>, %arg6: memref<1x8x256xf32, #tpu.memory_space<vmem>>) attributes {dimension_semantics = [#tpu.dimension_semantics<parallel>, #tpu.dimension_semantics<parallel>], iteration_bounds = array<i64: 2, 1>, scalar_prefetch = 0 : i64, scratch_operands = 0 : i64, tpu.core_type = #tpu.core_type<tc>, window_params = [{transform_indices = @transform_0, window_bounds = array<i64: 1, 4, 256>}, {pipeline_mode = #tpu.pipeline_mode<synchronous>, transform_indices = @transform_1, window_bounds = array<i64: 8, 4>}, {pipeline_mode = #tpu.pipeline_mode<synchronous>, transform_indices = @transform_2, window_bounds = array<i64: 8, 1>}, {pipeline_mode = #tpu.pipeline_mode<synchronous>, transform_indices = @transform_3, window_bounds = array<i64: 8, 1>}, {transform_indices = @transform_4, window_bounds = array<i64: 1, 8, 256>}]} {
    %c0 = arith.constant 0 : index
    %c0_0 = arith.constant 0 : index
    %c0_1 = arith.constant 0 : index
    %0 = vector.load %arg2[%c0, %c0_0, %c0_1] : memref<1x4x256xf32, #tpu.memory_space<vmem>>, vector<1x4x256xf32>
    %1 = vector.shape_cast %0 : vector<1x4x256xf32> to vector<4x256xf32>
    %c0_2 = arith.constant 0 : index
    %c0_3 = arith.constant 0 : index
    %2 = vector.load %arg3[%c0_2, %c0_3] : memref<8x4xf32, #tpu.memory_space<vmem>>, vector<8x4xf32>
    %cst = arith.constant dense<0.000000e+00> : vector<8x256xf32>
    %3 = tpu.matmul %2, %1, %cst {dimension_numbers = #tpu.dot_dimension_numbers<[1], [0], [0], [1], [0, 0, 1, 1], [], []>} : vector<8x4xf32>, vector<4x256xf32>, vector<8x256xf32> -> vector<8x256xf32>
    %c0_4 = arith.constant 0 : index
    %c0_5 = arith.constant 0 : index
    %4 = vector.load %arg4[%c0_4, %c0_5] : memref<8x1xf32, #tpu.memory_space<vmem>>, vector<8x1xf32>
    %5 = vector.broadcast %4 : vector<8x1xf32> to vector<8x256xf32>
    %6 = arith.mulf %3, %5 : vector<8x256xf32>
    %c0_6 = arith.constant 0 : index
    %c0_7 = arith.constant 0 : index
    %7 = vector.load %arg5[%c0_6, %c0_7] : memref<8x1xf32, #tpu.memory_space<vmem>>, vector<8x1xf32>
    %8 = vector.broadcast %7 : vector<8x1xf32> to vector<8x256xf32>
    %9 = arith.addf %6, %8 : vector<8x256xf32>
    %cst_8 = arith.constant 0.000000e+00 : f32
    %10 = vector.broadcast %cst_8 : f32 to vector<8x256xf32>
    %11 = arith.maximumf %9, %10 : vector<8x256xf32>
    %c0_9 = arith.constant 0 : index
    %c0_10 = arith.constant 0 : index
    %c0_11 = arith.constant 0 : index
    %12 = vector.load %arg6[%c0_9, %c0_10, %c0_11] : memref<1x8x256xf32, #tpu.memory_space<vmem>>, vector<1x8x256xf32>
    %13 = vector.shape_cast %12 : vector<1x8x256xf32> to vector<8x256xf32>
    %14 = vector.shape_cast %11 : vector<8x256xf32> to vector<1x8x256xf32>
    tpu.vector_store %arg6[%c0_9, %c0_10, %c0_11], %14 {strides = array<i32>} : memref<1x8x256xf32, #tpu.memory_space<vmem>>, vector<1x8x256xf32>,
    return
  }
  func.func @transform_0(%arg0: i32, %arg1: i32) -> (i32, i32, i32) {
    %c0_i32 = arith.constant 0 : i32
    %c0_i32_0 = arith.constant 0 : i32
    return %arg0, %c0_i32, %arg1 : i32, i32, i32
  }
  func.func @transform_1(%arg0: i32, %arg1: i32) -> (i32, i32) {
    %c0_i32 = arith.constant 0 : i32
    %c0_i32_0 = arith.constant 0 : i32
    %c0_i32_1 = arith.constant 0 : i32
    return %c0_i32, %c0_i32_0 : i32, i32
  }
  func.func @transform_2(%arg0: i32, %arg1: i32) -> (i32, i32) {
    %c0_i32 = arith.constant 0 : i32
    %c0_i32_0 = arith.constant 0 : i32
    %c0_i32_1 = arith.constant 0 : i32
    return %c0_i32, %c0_i32_0 : i32, i32
  }
  func.func @transform_3(%arg0: i32, %arg1: i32) -> (i32, i32) {
    %c0_i32 = arith.constant 0 : i32
    %c0_i32_0 = arith.constant 0 : i32
    %c0_i32_1 = arith.constant 0 : i32
    return %c0_i32, %c0_i32_0 : i32, i32
  }
  func.func @transform_4(%arg0: i32, %arg1: i32) -> (i32, i32, i32) {
    %c0_i32 = arith.constant 0 : i32
    %c0_i32_0 = arith.constant 0 : i32
    return %arg0, %c0_i32, %arg1 : i32, i32, i32
  }
}

</mosaic_0001>

<bundles_post_ra>
// kernel: conv1x1_layer_forward.1
= control target key start
LH: loop header
LB: loop body
LE: loop exit
PB: predicated region body
PF: predicated region fallthrough
CT: control target
= control target key end

     0   :  { %s523_s15 = smov 0   ;;  %s525_s16 = smov 0   ;;  %s565_s0 = inlined_call_operand.vmem [shape: f32[2,4,256], index: 0, kind: input, shape index: {}]   ;;  %s566_s1 = inlined_call_operand.vmem [shape: f32[8,4], index: 1, kind: input, shape index: {}]   ;;  %s567_s2 = inlined_call_operand.vmem [shape: f32[8,1], index: 2, kind: input, shape index: {}]   ;;  %s568_s3 = inlined_call_operand.vmem [shape: f32[8,1], index: 3, kind: input, shape index: {}]   ;;  %s569_s4 = inlined_call_operand.vmem [shape: f32[2,8,256], index: 4, kind: output, shape index: {}]  }
   0x1   :  { %s527_s17 = smov 0  }
   0x2 LB: > { %s26_s18 = sadd.s32 1, %s490_s16  ;;  %p432_p0 = scmp.ge.s32.totalorder %s494_s17, 1  ;;  %s494_s17 = sphi %s527_s17, %s14_s17   ;;  %s490_s16 = sphi %s525_s16, %s571_s16   ;;  %s486_s15 = sphi %s523_s15, %s570_s15  }
   0x3   : > { %p28_p1 = scmp.ge.s32.totalorder %s26_s18, 2  ;;  %p183_p2 = scmp.lt.s32.totalorder %s494_s17, 3 }
   0x5   : > { %s573_s18 = smov (%p28_p1, %s26_s18), 0  ;;  %p184_p3 = pnand %p432_p0, %p183_p2 }
   0x6   : > { %p218_p4 = scmp.lt.s32.totalorder (!%p184_p3), %s486_s15, 1  ;;  %v496_v0 = vmov (!%p184_p3), 0.0   ;;  %v497_v1 = vmov (!%p184_p3), 0   ;;  %v321_v2 = vld [vmem:[%s567_s2] sm:$0xff] (!%p184_p3)  ;;  %vm245_vm0 = vcmask (!%p184_p3), 1043456   ;;  %vm241_vm1 = vcmask (!%p184_p3), 31744  }
   0x7   : > { %187 = sbr.rel (%p184_p3) target bundleno = 242 (0xf2), region = 36  ;;  %314 = vmatprep.mubr.f32.mxu0 (!%p184_p3), %v496_v0  ;;  %470 = vset.pattern.permute.xlu0 (!%p184_p3), %v497_v1  ;;  %v329_v3 = vld [vmem:[%s568_s3] sm:$0xff] (!%p184_p3) }
   0x8   : > { %324 = vperm.xlu0 (!%p184_p3), %470, %v321_v2   ;;  %v238_v6 = vld [vmem:[%s566_s1] sm:$0xff] (!%p184_p3) }
   0xc   : > { %332 = vperm.xlu0 (!%p184_p3), %470, %v329_v3  }
   0xe   : > { %s575_s15 = smov (!%p218_p4, %s486_s15), 1 }
   0xf   : > { %s442_s23 = sshll.u32 %s575_s15, 3  ;;  %s443_s29 = sshll.u32 %s575_s15, 4 }
  0x10   : > { %s225_s26 = scalar_lea.vmem %s565_s0, %s442_s23  ;;  %s235_s6 = scalar_lea.vmem %s569_s4, %s443_s29 }
  0x11   : > { %v237_v4 = vld [vmem:[%s225_s26] sm:$0xff] }
  0x12   : > { %v240_v5 = vcombine.high %v237_v4, %v237_v4 }
  0x14   : > { %437 = vmatprep.subr.msk.mxu0 %vm245_vm0, %v240_v5 }
  0x15   : > { %438 = vmatpush1.msk.msra.mxu0 %vm245_vm0, %v237_v4 }
  0x16   : > { %439 = vmatmul.mubr.msk.f32.vlgmr.msra.gmra.mrb[0].mxu0 %vm241_vm1, %v238_v6 }
  0x87   : > { %v325_v7 = vpop.permute.xlu0 %324 }
  0x8b   : > { %v333_v11 = vpop.permute.xlu0 %332 }
  0xe9   : > { %v316_v8 = vpop.f32.mrb[0].mxu0 }
  0xea   : > { %v327_v9 = vmul.f32 %v325_v7, %v316_v8  ;;  %v318_v10 = vpop.f32.mrb[1].mxu0 }
  0xeb   : > { %v328_v12 = vmul.f32 %v325_v7, %v318_v10 }
  0xec   : > { %v335_v13 = vadd.f32 %v333_v11, %v327_v9 }
  0xed   : > { %v336_v14 = vadd.f32 %v333_v11, %v328_v12 }
  0xee   : > { %v337_v15 = vmax.f32 %v335_v13, 0.0 }
  0xef   : > { %v338_v16 = vmax.f32 %v336_v14, 0.0 }
  0xf0   : > { %339 = vst [vmem:[%s235_s6] sm:$0xff] %v337_v15 }
  0xf1   : > { %340 = vst [vmem:[%s235_s6 + $0x8] sm:$0xff] %v338_v16 }
  0xf2 PF: > { %s14_s17 = sadd.s32 1, %s494_s17   ;;  %s570_s15 = smov %s490_s16 }
  0xf3   : > { %p11_p5 = scmp.ge.s32.totalorder %s14_s17, 4   ;;  %s571_s16 = smov %s573_s18 }
  0xf5   :  { %13 = sbr.rel (!%p11_p5) target bundleno = 2 (0x2), region = 66 }

</bundles_post_ra>
